<compile_context>
chip_gen: v7x
topology: tpu7x:2x2x1
jax: 0.10.0
libtpu: 0.0.40
codegen_flags: <defaults>
</compile_context>

<pallas_src>
import functools

import jax
import jax.numpy as jnp
from jax.experimental import pallas as pl
from jax.experimental.pallas import tpu as pltpu  # noqa: F401 (TPU backend)

BN_EPS = 1e-5
LANE = 128


def _round_up(n, m):
    return ((n + m - 1) // m) * m


def _full_spec(shape):
    # Whole-array block, single kernel invocation (no grid).
    return pl.BlockSpec(shape, lambda: (0,) * len(shape))


# ---------------------------------------------------------------------------
# Fused kernel: [Linear + ReLU + BatchNorm1d] x L  +  final Linear
# ---------------------------------------------------------------------------
def mlp_fused_kernel(x_ref, hw_ref, hb_ref, hg_ref, hbe_ref, fw_ref, fb_ref,
                     out_ref, feat_ref):
    # x_ref:   [B, D_pad]        f32   (zero-padded input)
    # hw_ref:  [L, D_pad, D_pad] bf16  (pre-transposed: [in, out], zero-padded)
    # hb_ref:  [L, 1, D_pad]     f32   bias
    # hg_ref:  [L, 1, D_pad]     f32   BN gamma
    # hbe_ref: [L, 1, D_pad]     f32   BN beta
    # fw_ref:  [D_pad, C_pad]    bf16  classifier weight (pre-transposed)
    # fb_ref:  [1, C_pad]        f32   classifier bias
    h = x_ref[...]                                           # f32 activation
    num_hidden = hw_ref.shape[0]
    for l in range(num_hidden):                              # static, unrolled
        z = jnp.dot(h.astype(jnp.bfloat16), hw_ref[l],
                    preferred_element_type=jnp.float32)      # MXU, f32 acc
        z = jnp.maximum(z + hb_ref[l], 0.0)                  # bias + ReLU
        mean = jnp.mean(z, axis=0, keepdims=True)            # full-batch stats
        c = z - mean
        var = jnp.mean(c * c, axis=0, keepdims=True)         # biased variance
        inv = jax.lax.rsqrt(var + BN_EPS)                    # EUP
        h = c * (inv * hg_ref[l]) + hbe_ref[l]               # reuse centered c
    feat_ref[...] = h
    out_ref[...] = (
        jnp.dot(h.astype(jnp.bfloat16), fw_ref[...],
                preferred_element_type=jnp.float32) + fb_ref[...])


# ---------------------------------------------------------------------------
# Parameter construction (deterministic, PyTorch-style uniform init)
# ---------------------------------------------------------------------------
def init_linear(key, in_dim, out_dim):
    kw, kb = jax.random.split(key)
    bound = 1.0 / jnp.sqrt(jnp.float32(in_dim))
    w = jax.random.uniform(kw, (out_dim, in_dim), jnp.float32, -bound, bound)
    b = jax.random.uniform(kb, (out_dim,), jnp.float32, -bound, bound)
    return w, b


def init_mlp_params(key, data_dim, hidden_dim, num_layers, num_classes):
    """Mirrors MLP.__init__ (non_linear=True, bn=True, etf=False, fix_dim=False)."""
    assert num_layers >= 2, "need at least one hidden block"
    layers = []
    for i in range(1, num_layers):
        key, sub = jax.random.split(key)
        in_dim = data_dim if i == 1 else hidden_dim
        w, b = init_linear(sub, in_dim, hidden_dim)
        gamma = jnp.ones((hidden_dim,), jnp.float32)   # BatchNorm1d weight
        beta = jnp.zeros((hidden_dim,), jnp.float32)   # BatchNorm1d bias
        layers.append((w, b, gamma, beta))
    key, sub = jax.random.split(key)
    fc = init_linear(sub, hidden_dim, num_classes)
    return {"layers": layers, "fc": fc}


def pack_params(params, data_dim, hidden_dim, num_classes):
    """One-time packing: transpose, zero-pad to 128 lanes, stack layers, bf16 weights."""
    d_pad = _round_up(max(data_dim, hidden_dim), LANE)
    c_pad = _round_up(num_classes, LANE)
    hw, hb, hg, hbe = [], [], [], []
    for (w, b, gamma, beta) in params["layers"]:
        out_dim, in_dim = w.shape
        wt = jnp.zeros((d_pad, d_pad), jnp.bfloat16)
        wt = wt.at[:in_dim, :out_dim].set(w.T.astype(jnp.bfloat16))
        hw.append(wt)
        hb.append(jnp.zeros((1, d_pad), jnp.float32).at[0, :out_dim].set(b))
        hg.append(jnp.zeros((1, d_pad), jnp.float32).at[0, :out_dim].set(gamma))
        hbe.append(jnp.zeros((1, d_pad), jnp.float32).at[0, :out_dim].set(beta))
    fw, fb = params["fc"]
    fw_p = jnp.zeros((d_pad, c_pad), jnp.bfloat16)
    fw_p = fw_p.at[:hidden_dim, :num_classes].set(fw.T.astype(jnp.bfloat16))
    fb_p = jnp.zeros((1, c_pad), jnp.float32).at[0, :num_classes].set(fb)
    return {
        "hw": jnp.stack(hw), "hb": jnp.stack(hb),
        "hg": jnp.stack(hg), "hbe": jnp.stack(hbe),
        "fw": fw_p, "fb": fb_p,
    }


# ---------------------------------------------------------------------------
# Forward pass (matches MLP.forward: returns (out, features))
# ---------------------------------------------------------------------------
@functools.partial(jax.jit, static_argnames=("data_dim", "hidden_dim", "num_classes"))
def mlp_forward(packed, x, *, data_dim, hidden_dim, num_classes):
    B = x.shape[0]
    L = int(packed["hw"].shape[0])
    d_pad = int(packed["hw"].shape[-1])
    c_pad = int(packed["fw"].shape[-1])

    # Lane-dense, zero-padded input.  Batch is NOT padded (BN needs exact stats).
    x_pad = jnp.zeros((B, d_pad), jnp.float32).at[:, :data_dim].set(x)

    flops = 2 * B * d_pad * d_pad * L + 2 * B * d_pad * c_pad + 10 * B * d_pad * L
    bytes_accessed = int(
        x_pad.size * 4
        + packed["hw"].size * 2
        + (packed["hb"].size + packed["hg"].size + packed["hbe"].size) * 4
        + packed["fw"].size * 2 + packed["fb"].size * 4
        + B * c_pad * 4 + B * d_pad * 4)

    out_p, feat_p = pl.pallas_call(
        mlp_fused_kernel,
        out_shape=(jax.ShapeDtypeStruct((B, c_pad), jnp.float32),
                   jax.ShapeDtypeStruct((B, d_pad), jnp.float32)),
        in_specs=[
            _full_spec(x_pad.shape),
            _full_spec(packed["hw"].shape),
            _full_spec(packed["hb"].shape),
            _full_spec(packed["hg"].shape),
            _full_spec(packed["hbe"].shape),
            _full_spec(packed["fw"].shape),
            _full_spec(packed["fb"].shape),
        ],
        out_specs=(_full_spec((B, c_pad)), _full_spec((B, d_pad))),
        cost_estimate=pl.CostEstimate(flops=int(flops),
                                      transcendentals=int(L * d_pad),
                                      bytes_accessed=bytes_accessed),
    )(x_pad, packed["hw"], packed["hb"], packed["hg"], packed["hbe"],
      packed["fw"], packed["fb"])

    # Slice back to logical widths outside the kernel (cheap XLA slice).
    return out_p[:, :num_classes], feat_p[:, :hidden_dim]


# ---------------------------------------------------------------------------
# Pure-JAX reference (same bf16-matmul / f32-accumulate numerics)
# ---------------------------------------------------------------------------
def mlp_reference(params, x):
    h = x
    for (w, b, gamma, beta) in params["layers"]:
        z = jnp.dot(h.astype(jnp.bfloat16), w.T.astype(jnp.bfloat16),
                    preferred_element_type=jnp.float32) + b
        z = jnp.maximum(z, 0.0)
        mean = jnp.mean(z, axis=0, keepdims=True)
        c = z - mean
        var = jnp.mean(c * c, axis=0, keepdims=True)
        h = c * jax.lax.rsqrt(var + BN_EPS) * gamma + beta
    fw, fb = params["fc"]
    out = jnp.dot(h.astype(jnp.bfloat16), fw.T.astype(jnp.bfloat16),
                  preferred_element_type=jnp.float32) + fb
    return out, h


# ---------------------------------------------------------------------------
# Main
# ---------------------------------------------------------------------------
if __name__ == "__main__":
    batch = 8
    data_dim = 32
    hidden_dim = 32
    num_layers = 3          # -> 2 hidden (Linear+ReLU+BN) blocks + fc
    num_classes = 6

    key = jax.random.PRNGKey(0)
    key, kx, kp = jax.random.split(key, 3)

    x = jax.random.normal(kx, (batch, data_dim), jnp.float32)
    params = init_mlp_params(kp, data_dim, hidden_dim, num_layers, num_classes)
    packed = pack_params(params, data_dim, hidden_dim, num_classes)

    out, feats = mlp_forward(packed, x, data_dim=data_dim,
                             hidden_dim=hidden_dim, num_classes=num_classes)
    out, feats = jax.block_until_ready((out, feats))

    assert out.shape == (batch, num_classes), out.shape
    assert feats.shape == (batch, hidden_dim), feats.shape
    assert jnp.all(jnp.isfinite(out)) and jnp.all(jnp.isfinite(feats))

    # Correctness vs. pure-JAX reference using identical bf16/f32 numerics.
    out_ref, feats_ref = mlp_reference(params, x)
    assert jnp.allclose(out, out_ref, atol=2e-3, rtol=2e-3), float(
        jnp.max(jnp.abs(out - out_ref)))
    assert jnp.allclose(feats, feats_ref, atol=2e-3, rtol=2e-3), float(
        jnp.max(jnp.abs(feats - feats_ref)))

    # TODO(synk): BatchNorm1d running_mean/running_var buffers are not tracked
    # (training-mode batch statistics only, matching a single forward pass).

    print("KERNEL_OK")
</pallas_src>

<mosaic_0001>
module attributes {stable_mosaic.version = 11 : i64} {
  func.func @mlp_fused_kernel(%arg0: memref<8x128xf32, #tpu.memory_space<vmem>>, %arg1: memref<2x128x128xbf16, #tpu.memory_space<vmem>>, %arg2: memref<2x1x128xf32, #tpu.memory_space<vmem>>, %arg3: memref<2x1x128xf32, #tpu.memory_space<vmem>>, %arg4: memref<2x1x128xf32, #tpu.memory_space<vmem>>, %arg5: memref<128x128xbf16, #tpu.memory_space<vmem>>, %arg6: memref<1x128xf32, #tpu.memory_space<vmem>>, %arg7: memref<8x128xf32, #tpu.memory_space<vmem>>, %arg8: memref<8x128xf32, #tpu.memory_space<vmem>>) attributes {dimension_semantics = [], scalar_prefetch = 0 : i64, scratch_operands = 0 : i64, tpu.core_type = #tpu.core_type<tc>} {
    %c0 = arith.constant 0 : index
    %c0_0 = arith.constant 0 : index
    %0 = vector.load %arg0[%c0, %c0_0] : memref<8x128xf32, #tpu.memory_space<vmem>>, vector<8x128xf32>
    %1 = arith.truncf %0 : vector<8x128xf32> to vector<8x128xbf16>
    %c0_1 = arith.constant 0 : index
    %c0_2 = arith.constant 0 : index
    %c0_3 = arith.constant 0 : index
    %2 = vector.load %arg1[%c0_1, %c0_2, %c0_3] : memref<2x128x128xbf16, #tpu.memory_space<vmem>>, vector<1x128x128xbf16>
    %3 = vector.shape_cast %2 : vector<1x128x128xbf16> to vector<128x128xbf16>
    %cst = arith.constant dense<0.000000e+00> : vector<8x128xf32>
    %4 = tpu.matmul %1, %3, %cst {dimension_numbers = #tpu.dot_dimension_numbers<[1], [0], [0], [1], [0, 0, 1, 1], [], []>} : vector<8x128xbf16>, vector<128x128xbf16>, vector<8x128xf32> -> vector<8x128xf32>
    %c0_4 = arith.constant 0 : index
    %c0_5 = arith.constant 0 : index
    %c0_6 = arith.constant 0 : index
    %5 = vector.load %arg2[%c0_4, %c0_5, %c0_6] : memref<2x1x128xf32, #tpu.memory_space<vmem>>, vector<1x1x128xf32>
    %6 = vector.shape_cast %5 : vector<1x1x128xf32> to vector<1x128xf32>
    %7 = vector.broadcast %6 : vector<1x128xf32> to vector<8x128xf32>
    %8 = arith.addf %4, %7 : vector<8x128xf32>
    %cst_7 = arith.constant 0.000000e+00 : f32
    %9 = vector.broadcast %cst_7 : f32 to vector<8x128xf32>
    %10 = arith.maximumf %8, %9 : vector<8x128xf32>
    %cst_8 = arith.constant dense<0.000000e+00> : vector<128xf32>
    %11 = vector.multi_reduction <add>, %10, %cst_8 [0] : vector<8x128xf32> to vector<128xf32>
    %12 = vector.shape_cast %11 : vector<128xf32> to vector<1x128xf32>
    %cst_9 = arith.constant 8.000000e+00 : f32
    %13 = vector.broadcast %cst_9 : f32 to vector<1x128xf32>
    %14 = arith.divf %12, %13 : vector<1x128xf32>
    %15 = vector.broadcast %14 : vector<1x128xf32> to vector<8x128xf32>
    %16 = arith.subf %10, %15 : vector<8x128xf32>
    %17 = arith.mulf %16, %16 : vector<8x128xf32>
    %cst_10 = arith.constant dense<0.000000e+00> : vector<128xf32>
    %18 = vector.multi_reduction <add>, %17, %cst_10 [0] : vector<8x128xf32> to vector<128xf32>
    %19 = vector.shape_cast %18 : vector<128xf32> to vector<1x128xf32>
    %cst_11 = arith.constant 8.000000e+00 : f32
    %20 = vector.broadcast %cst_11 : f32 to vector<1x128xf32>
    %21 = arith.divf %19, %20 : vector<1x128xf32>
    %cst_12 = arith.constant 9.99999974E-6 : f32
    %22 = vector.broadcast %cst_12 : f32 to vector<1x128xf32>
    %23 = arith.addf %21, %22 : vector<1x128xf32>
    %24 = math.rsqrt %23 : vector<1x128xf32>
    %c0_13 = arith.constant 0 : index
    %c0_14 = arith.constant 0 : index
    %c0_15 = arith.constant 0 : index
    %25 = vector.load %arg3[%c0_13, %c0_14, %c0_15] : memref<2x1x128xf32, #tpu.memory_space<vmem>>, vector<1x1x128xf32>
    %26 = vector.shape_cast %25 : vector<1x1x128xf32> to vector<1x128xf32>
    %27 = arith.mulf %24, %26 : vector<1x128xf32>
    %28 = vector.broadcast %27 : vector<1x128xf32> to vector<8x128xf32>
    %29 = arith.mulf %16, %28 : vector<8x128xf32>
    %c0_16 = arith.constant 0 : index
    %c0_17 = arith.constant 0 : index
    %c0_18 = arith.constant 0 : index
    %30 = vector.load %arg4[%c0_16, %c0_17, %c0_18] : memref<2x1x128xf32, #tpu.memory_space<vmem>>, vector<1x1x128xf32>
    %31 = vector.shape_cast %30 : vector<1x1x128xf32> to vector<1x128xf32>
    %32 = vector.broadcast %31 : vector<1x128xf32> to vector<8x128xf32>
    %33 = arith.addf %29, %32 : vector<8x128xf32>
    %34 = arith.truncf %33 : vector<8x128xf32> to vector<8x128xbf16>
    %c1 = arith.constant 1 : index
    %c0_19 = arith.constant 0 : index
    %c0_20 = arith.constant 0 : index
    %35 = vector.load %arg1[%c1, %c0_19, %c0_20] : memref<2x128x128xbf16, #tpu.memory_space<vmem>>, vector<1x128x128xbf16>
    %36 = vector.shape_cast %35 : vector<1x128x128xbf16> to vector<128x128xbf16>
    %cst_21 = arith.constant dense<0.000000e+00> : vector<8x128xf32>
    %37 = tpu.matmul %34, %36, %cst_21 {dimension_numbers = #tpu.dot_dimension_numbers<[1], [0], [0], [1], [0, 0, 1, 1], [], []>} : vector<8x128xbf16>, vector<128x128xbf16>, vector<8x128xf32> -> vector<8x128xf32>
    %c1_22 = arith.constant 1 : index
    %c0_23 = arith.constant 0 : index
    %c0_24 = arith.constant 0 : index
    %38 = vector.load %arg2[%c1_22, %c0_23, %c0_24] : memref<2x1x128xf32, #tpu.memory_space<vmem>>, vector<1x1x128xf32>
    %39 = vector.shape_cast %38 : vector<1x1x128xf32> to vector<1x128xf32>
    %40 = vector.broadcast %39 : vector<1x128xf32> to vector<8x128xf32>
    %41 = arith.addf %37, %40 : vector<8x128xf32>
    %cst_25 = arith.constant 0.000000e+00 : f32
    %42 = vector.broadcast %cst_25 : f32 to vector<8x128xf32>
    %43 = arith.maximumf %41, %42 : vector<8x128xf32>
    %cst_26 = arith.constant dense<0.000000e+00> : vector<128xf32>
    %44 = vector.multi_reduction <add>, %43, %cst_26 [0] : vector<8x128xf32> to vector<128xf32>
    %45 = vector.shape_cast %44 : vector<128xf32> to vector<1x128xf32>
    %cst_27 = arith.constant 8.000000e+00 : f32
    %46 = vector.broadcast %cst_27 : f32 to vector<1x128xf32>
    %47 = arith.divf %45, %46 : vector<1x128xf32>
    %48 = vector.broadcast %47 : vector<1x128xf32> to vector<8x128xf32>
    %49 = arith.subf %43, %48 : vector<8x128xf32>
    %50 = arith.mulf %49, %49 : vector<8x128xf32>
    %cst_28 = arith.constant dense<0.000000e+00> : vector<128xf32>
    %51 = vector.multi_reduction <add>, %50, %cst_28 [0] : vector<8x128xf32> to vector<128xf32>
    %52 = vector.shape_cast %51 : vector<128xf32> to vector<1x128xf32>
    %cst_29 = arith.constant 8.000000e+00 : f32
    %53 = vector.broadcast %cst_29 : f32 to vector<1x128xf32>
    %54 = arith.divf %52, %53 : vector<1x128xf32>
    %cst_30 = arith.constant 9.99999974E-6 : f32
    %55 = vector.broadcast %cst_30 : f32 to vector<1x128xf32>
    %56 = arith.addf %54, %55 : vector<1x128xf32>
    %57 = math.rsqrt %56 : vector<1x128xf32>
    %c1_31 = arith.constant 1 : index
    %c0_32 = arith.constant 0 : index
    %c0_33 = arith.constant 0 : index
    %58 = vector.load %arg3[%c1_31, %c0_32, %c0_33] : memref<2x1x128xf32, #tpu.memory_space<vmem>>, vector<1x1x128xf32>
    %59 = vector.shape_cast %58 : vector<1x1x128xf32> to vector<1x128xf32>
    %60 = arith.mulf %57, %59 : vector<1x128xf32>
    %61 = vector.broadcast %60 : vector<1x128xf32> to vector<8x128xf32>
    %62 = arith.mulf %49, %61 : vector<8x128xf32>
    %c1_34 = arith.constant 1 : index
    %c0_35 = arith.constant 0 : index
    %c0_36 = arith.constant 0 : index
    %63 = vector.load %arg4[%c1_34, %c0_35, %c0_36] : memref<2x1x128xf32, #tpu.memory_space<vmem>>, vector<1x1x128xf32>
    %64 = vector.shape_cast %63 : vector<1x1x128xf32> to vector<1x128xf32>
    %65 = vector.broadcast %64 : vector<1x128xf32> to vector<8x128xf32>
    %66 = arith.addf %62, %65 : vector<8x128xf32>
    %c0_37 = arith.constant 0 : index
    %c0_38 = arith.constant 0 : index
    %67 = vector.load %arg8[%c0_37, %c0_38] : memref<8x128xf32, #tpu.memory_space<vmem>>, vector<8x128xf32>
    tpu.vector_store %arg8[%c0_37, %c0_38], %66 {strides = array<i32>} : memref<8x128xf32, #tpu.memory_space<vmem>>, vector<8x128xf32>,
    %68 = arith.truncf %66 : vector<8x128xf32> to vector<8x128xbf16>
    %c0_39 = arith.constant 0 : index
    %c0_40 = arith.constant 0 : index
    %69 = vector.load %arg5[%c0_39, %c0_40] : memref<128x128xbf16, #tpu.memory_space<vmem>>, vector<128x128xbf16>
    %cst_41 = arith.constant dense<0.000000e+00> : vector<8x128xf32>
    %70 = tpu.matmul %68, %69, %cst_41 {dimension_numbers = #tpu.dot_dimension_numbers<[1], [0], [0], [1], [0, 0, 1, 1], [], []>} : vector<8x128xbf16>, vector<128x128xbf16>, vector<8x128xf32> -> vector<8x128xf32>
    %c0_42 = arith.constant 0 : index
    %c0_43 = arith.constant 0 : index
    %71 = vector.load %arg6[%c0_42, %c0_43] : memref<1x128xf32, #tpu.memory_space<vmem>>, vector<1x128xf32>
    %72 = vector.broadcast %71 : vector<1x128xf32> to vector<8x128xf32>
    %73 = arith.addf %70, %72 : vector<8x128xf32>
    %c0_44 = arith.constant 0 : index
    %c0_45 = arith.constant 0 : index
    %74 = vector.load %arg7[%c0_44, %c0_45] : memref<8x128xf32, #tpu.memory_space<vmem>>, vector<8x128xf32>
    tpu.vector_store %arg7[%c0_44, %c0_45], %73 {strides = array<i32>} : memref<8x128xf32, #tpu.memory_space<vmem>>, vector<8x128xf32>,
    return
  }
}

</mosaic_0001>

<bundles_post_ra>
// kernel: mlp_forward.1
= control target key start
LH: loop header
LB: loop body
LE: loop exit
PB: predicated region body
PF: predicated region fallthrough
CT: control target
= control target key end

     0   :  { %14 = vsyncpa [#allocation3], 0  ;;  %s910_s0 = inlined_call_operand.vmem [shape: f32[8,128], index: 0, kind: input, shape index: {}]   ;;  %s911_s1 = inlined_call_operand.hbm [shape: bf16[2,128,128], index: 1, kind: input, shape index: {}]   ;;  %s912_s2 = inlined_call_operand.vmem [shape: f32[2,1,128], index: 2, kind: input, shape index: {}]   ;;  %s913_s3 = inlined_call_operand.vmem [shape: f32[2,1,128], index: 3, kind: input, shape index: {}]   ;;  %s914_s4 = inlined_call_operand.vmem [shape: f32[2,1,128], index: 4, kind: input, shape index: {}]   ;;  %s915_s5 = inlined_call_operand.hbm [shape: bf16[128,128], index: 5, kind: input, shape index: {}]   ;;  %s916_s6 = inlined_call_operand.vmem [shape: f32[1,128], index: 6, kind: input, shape index: {}]   ;;  %s917_s7 = inlined_call_operand.hbm [shape: f32[8,128], index: 7, kind: output, shape index: {0}]   ;;  %s918_s8 = inlined_call_operand.hbm [shape: f32[8,128], index: 8, kind: output, shape index: {1}]  }
   0x1   :  { %15 = vsyncpa [#allocation6], 0 }
   0x2   :  { %16 = vsyncpa [#allocation4], 0 }
   0x3   :  { %17 = vsyncpa [#allocation9], 0  ;;  %s752_s27 = smov [#allocation2]   ;;  %s656_s9 = scalar_lea.hbm %s911_s1, 2048 }
   0x4   :  { %s25_s28 = sshll.u32 %s752_s27, 4  ;;  %p657_p0 = scmp.ne.s32.totalorder %s911_s1, %s656_s9  ;;  %s26_s28 = int_to_ptr.vmem [resolvable:$true] %s25_s28 }
   0x5   :  { %p660_p1 = scmp.lt.u32.totalorder %s656_s9, %s911_s1 }
   0x7   :  { %p662_p2 = pnand %p660_p1, %p657_p0 }
   0x9   :  { %665 = shalt.err (!%p662_p2)
}
   0xa   :  { %s666_s14 = scalar_lea.vmem %s26_s28, 2048  ;;  %p671_p4 = scmp.lt.s32.totalorder %s26_s28, %s26_s28 }
   0xb   :  { %p667_p3 = scmp.ne.s32.totalorder %s26_s28, %s666_s14  ;;  %p672_p5 = scmp.lt.s32.totalorder %s666_s14, %s666_s14 }
   0xd   :  { %p673_p6 = por %p672_p5, %p671_p4 }
   0xf   :  { %p674_p7 = pnand %p673_p6, %p667_p3 }
  0x11   :  { %677 = shalt.err (!%p674_p7)
}
  0x12   :  { %s753_s15 = smov 64   ;;  %s754_s16 = smov 4  }
  0x13   :  { %31 = dma.hbm_to_vmem [thread:$0]  %s911_s1, 2048, %s26_s28, [#allocation3], %s753_s15, %s753_s15, %s754_s16  }
  0x14   :  { %s755_s19 = smov [#allocation5]   ;;  %s678_s23 = scalar_lea.hbm %s915_s5, 1024 }
  0x15   :  { %s43_s20 = sshll.u32 %s755_s19, 4  ;;  %p679_p8 = scmp.ne.s32.totalorder %s915_s5, %s678_s23  ;;  %s44_s20 = int_to_ptr.vmem [resolvable:$true] %s43_s20 }
  0x16   :  { %p682_p9 = scmp.lt.u32.totalorder %s678_s23, %s915_s5 }
  0x18   :  { %p684_p10 = pnand %p682_p9, %p679_p8 }
  0x1a   :  { %687 = shalt.err (!%p684_p10)
}
  0x1b   :  { %s688_s29 = scalar_lea.vmem %s44_s20, 1024  ;;  %p693_p12 = scmp.lt.s32.totalorder %s44_s20, %s44_s20 }
  0x1c   :  { %p689_p11 = scmp.ne.s32.totalorder %s44_s20, %s688_s29  ;;  %p694_p13 = scmp.lt.s32.totalorder %s688_s29, %s688_s29 }
  0x1e   :  { %p695_p0 = por %p694_p13, %p693_p12 }
  0x20   :  { %p696_p1 = pnand %p695_p0, %p689_p11 }
  0x22   :  { %699 = shalt.err (!%p696_p1)
}
  0x23   :  { %49 = dma.hbm_to_vmem [thread:$0]  %s915_s5, 1024, %s44_s20, [#allocation6], %s753_s15, %s753_s15, %s754_s16  }
  0x24   :  { %744 = dma.done.wait [#allocation3], 2048  }
  0x25   :  { %745 = vsyncadd [#allocation3], 4294965248 }
  0x26   :  { %746 = dma.done.wait [#allocation6], 1024  }
  0x27   :  { %747 = vsyncadd [#allocation6], 4294966272  ;;  %v756_v0 = vmov 0.0   ;;  %vm757_vm0 = vmmov 0   ;;  %v628_v1 = vld [vmem:[#allocation2] sm:$0xff]   ;;  %v629_v2 = vld [vmem:[#allocation2 + $0x8] sm:$0xff]   ;;  %v194_v43 = vlaneseq }
  0x28   :  { %560 = vmatprep.subr.bf16.mxu0 %v756_v0  ;;  %576 = vmatprep.mubr.msk.bf16.mxu0 %vm757_vm0, %v756_v0  ;;  %v630_v3 = vld [vmem:[#allocation2 + $0x10] sm:$0xff]   ;;  %v631_v4 = vld [vmem:[#allocation2 + $0x18] sm:$0xff]   ;;  %v632_v5 = vld [vmem:[#allocation2 + $0x20] sm:$0xff]   ;;  %s758_s19 = smov [#allocation8]  }
  0x29   :  { %580 = vmatprep.subr.bf16.mxu1 %v756_v0  ;;  %596 = vmatprep.mubr.msk.bf16.mxu1 %vm757_vm0, %v756_v0  ;;  %v633_v6 = vld [vmem:[#allocation2 + $0x28] sm:$0xff]   ;;  %v634_v7 = vld [vmem:[#allocation2 + $0x30] sm:$0xff]   ;;  %v635_v8 = vld [vmem:[#allocation2 + $0x38] sm:$0xff]   ;;  %v858_v44 = vshrl.u32 %v194_v43, 7  ;;  %s487_s20 = sshll.u32 %s758_s19, 4  ;;  %s488_s20 = int_to_ptr.vmem [resolvable:$true] %s487_s20 }
  0x2a   :  { %561 = vmatpush3.bf16.msra.mxu0 %v628_v1  ;;  %v59_v9 = vld [vmem:[%s910_s0] sm:$0xff]  ;;  %v637_v12 = vld [vmem:[#allocation2 + $0x48] sm:$0xff]   ;;  %v638_v13 = vld [vmem:[#allocation2 + $0x50] sm:$0xff]   ;;  %s700_s21 = scalar_lea.vmem %s488_s20, 128  ;;  %p705_p3 = scmp.lt.s32.totalorder %s488_s20, %s488_s20 }
  0x2b   :  { %562 = vmatprep.subr.bf16.mxu0 %v756_v0  ;;  %v60_v10 = vpack.c.bf16 %v59_v9, %v59_v9  ;;  %v636_v11 = vld [vmem:[#allocation2 + $0x40] sm:$0xff]   ;;  %v639_v14 = vld [vmem:[#allocation2 + $0x58] sm:$0xff]   ;;  %v641_v16 = vld [vmem:[#allocation2 + $0x68] sm:$0xff]   ;;  %v196_v46 = vsub.s32 0, %v858_v44  ;;  %p701_p2 = scmp.ne.s32.totalorder %s488_s20, %s700_s21  ;;  %p706_p4 = scmp.lt.s32.totalorder %s700_s21, %s700_s21 }
  0x2c   :  { %581 = vmatpush3.bf16.msra.mxu1 %v636_v11  ;;  %v640_v15 = vld [vmem:[#allocation2 + $0x60] sm:$0xff]   ;;  %v642_v17 = vld [vmem:[#allocation2 + $0x70] sm:$0xff]   ;;  %v643_v18 = vld [vmem:[#allocation2 + $0x78] sm:$0xff]  }
  0x2d   :  { %582 = vmatprep.subr.bf16.mxu1 %v756_v0  ;;  %v501_v19 = vld [vmem:[%s912_s2] ss:$0 sm:$0xff]  ;;  %v645_v55 = vld [vmem:[#allocation5 + $0x8] sm:$0xff]   ;;  %v646_v56 = vld [vmem:[#allocation5 + $0x10] sm:$0xff]   ;;  %p707_p5 = por %p706_p4, %p705_p3 }
  0x2e   :  { %563 = vmatpush3.bf16.msra.mxu0 %v629_v2  ;;  %v192_v45 = vld [vmem:[%s913_s3] sm:$0x1]  ;;  %v647_v57 = vld [vmem:[#allocation5 + $0x18] sm:$0xff]   ;;  %v649_v59 = vld [vmem:[#allocation5 + $0x28] sm:$0xff]  }
  0x2f   :  { %564 = vmatprep.subr.bf16.mxu0 %v756_v0  ;;  %v510_v50 = vld [vmem:[%s914_s4] ss:$0 sm:$0xff]  ;;  %v650_v60 = vld [vmem:[#allocation5 + $0x30] sm:$0xff]   ;;  %v651_v61 = vld [vmem:[#allocation5 + $0x38] sm:$0xff]   ;;  %p708_p6 = pnand %p707_p5, %p701_p2 }
  0x30   :  { %583 = vmatpush3.bf16.msra.mxu1 %v637_v12  ;;  %v644_v54 = vld [vmem:[#allocation5] sm:$0xff]  }
  0x31   :  { %584 = vmatprep.subr.bf16.mxu1 %v756_v0  ;;  %v648_v58 = vld [vmem:[#allocation5 + $0x20] sm:$0xff]  }
  0x32   :  { %565 = vmatpush3.bf16.msra.mxu0 %v630_v3  ;;  %v512_v62 = vld [vmem:[%s912_s2 + $0x1] ss:$0 sm:$0xff] }
  0x33   :  { %566 = vmatprep.subr.bf16.mxu0 %v756_v0 }
  0x34   :  { %585 = vmatpush3.bf16.msra.mxu1 %v638_v13 }
  0x35   :  { %586 = vmatprep.subr.bf16.mxu1 %v756_v0 }
  0x36   :  { %567 = vmatpush3.bf16.msra.mxu0 %v631_v4 }
  0x37   :  { %568 = vmatprep.subr.bf16.mxu0 %v756_v0 }
  0x38   :  { %587 = vmatpush3.bf16.msra.mxu1 %v639_v14 }
  0x39   :  { %588 = vmatprep.subr.bf16.mxu1 %v756_v0 }
  0x3a   :  { %569 = vmatpush3.bf16.msra.mxu0 %v632_v5 }
  0x3b   :  { %570 = vmatprep.subr.bf16.mxu0 %v756_v0 }
  0x3c   :  { %589 = vmatpush3.bf16.msra.mxu1 %v640_v15 }
  0x3d   :  { %590 = vmatprep.subr.bf16.mxu1 %v756_v0 }
  0x3e   :  { %571 = vmatpush3.bf16.msra.mxu0 %v633_v6 }
  0x3f   :  { %572 = vmatprep.subr.bf16.mxu0 %v756_v0 }
  0x40   :  { %591 = vmatpush3.bf16.msra.mxu1 %v641_v16 }
  0x41   :  { %592 = vmatprep.subr.bf16.mxu1 %v756_v0 }
  0x42   :  { %573 = vmatpush3.bf16.msra.mxu0 %v634_v7 }
  0x43   :  { %574 = vmatprep.subr.bf16.mxu0 %v756_v0 }
  0x44   :  { %593 = vmatpush3.bf16.msra.mxu1 %v642_v17 }
  0x45   :  { %594 = vmatprep.subr.bf16.mxu1 %v756_v0 }
  0x46   :  { %575 = vmatpush3.bf16.msra.mxu0 %v635_v8 }
  0x47   :  { %600 = vmatprep.subr.bf16.mxu0 %v756_v0 }
  0x48   :  { %595 = vmatpush3.bf16.msra.mxu1 %v643_v18 }
  0x49   :  { %577 = vmatmul.mubr.bf16.vlgmr.msra.gmra.mrb[0].mxu0 %v60_v10 }
  0x4a   :  { %616 = vmatprep.mubr.msk.bf16.mxu0 %vm757_vm0, %v756_v0  ;;  %601 = vmatpush3.bf16.msra.mxu0 %v644_v54 }
  0x4b   :  { %602 = vmatprep.subr.bf16.mxu0 %v756_v0 }
  0x4e   :  { %603 = vmatpush3.bf16.msra.mxu0 %v645_v55 }
  0x4f   :  { %604 = vmatprep.subr.bf16.mxu0 %v756_v0 }
  0x52   :  { %605 = vmatpush3.bf16.msra.mxu0 %v646_v56 }
  0x53   :  { %606 = vmatprep.subr.bf16.mxu0 %v756_v0 }
  0x56   :  { %607 = vmatpush3.bf16.msra.mxu0 %v647_v57 }
  0x57   :  { %608 = vmatprep.subr.bf16.mxu0 %v756_v0 }
  0x5a   :  { %609 = vmatpush3.bf16.msra.mxu0 %v648_v58 }
  0x5b   :  { %610 = vmatprep.subr.bf16.mxu0 %v756_v0 }
  0x5e   :  { %611 = vmatpush3.bf16.msra.mxu0 %v649_v59 }
  0x5f   :  { %612 = vmatprep.subr.bf16.mxu0 %v756_v0 }
  0x62   :  { %613 = vmatpush3.bf16.msra.mxu0 %v650_v60 }
  0x63   :  { %614 = vmatprep.subr.bf16.mxu0 %v756_v0 }
  0x66   :  { %615 = vmatpush3.bf16.msra.mxu0 %v651_v61 }
 0x11c   :  { %v166_v20 = vpop.f32.mrb[0].mxu0 }
 0x11d   :  { %v167_v21 = vadd.f32 %v501_v19, %v166_v20  ;;  %v578_v22 = vpop.f32.mrb[1].mxu0 }
 0x11e   :  { %v169_v23 = vpop.f32.mrb[2].mxu0  ;;  %v521_v22 = vld [vmem:[%s913_s3 + $0x1] sm:$0x1] }
 0x11f   :  { %v172_v24 = vmax.f32 %v167_v21, 0.0  ;;  %v579_v25 = vpop.f32.mrb[3].mxu0 }
 0x121   :  { %v173_v26 = vrot.slane %v172_v24, 4 }
 0x123   :  { %v174_v27 = vadd.f32 %v173_v26, %v172_v24  ;;  %v523_v26 = vld [vmem:[%s914_s4 + $0x1] ss:$0 sm:$0xff] }
 0x125   :  { %v175_v28 = vrot.slane %v174_v27, 2 }
 0x127   :  { %v176_v29 = vadd.f32 %v175_v28, %v174_v27 }
 0x129   :  { %v177_v30 = vrot.slane %v176_v29, 1 }
 0x12b   :  { %v178_v31 = vadd.f32 %v177_v30, %v176_v29 }
 0x12d   :  { %v180_v32 = vmul.f32 0.125, %v178_v31 }
 0x12f   :  { %v181_v33 = vsub.f32 %v172_v24, %v180_v32 }
 0x131   :  { %v182_v34 = vmul.f32 %v181_v33, %v181_v33 }
 0x133   :  { %v183_v35 = vrot.slane %v182_v34, 4 }
 0x135   :  { %v184_v36 = vadd.f32 %v183_v35, %v182_v34 }
 0x137   :  { %v185_v37 = vrot.slane %v184_v36, 2 }
 0x139   :  { %v186_v38 = vadd.f32 %v185_v37, %v184_v36 }
 0x13b   :  { %v187_v39 = vrot.slane %v186_v38, 1 }
 0x13d   :  { %v188_v40 = vadd.f32 %v187_v39, %v186_v38 }
 0x13f   :  { %v189_v41 = vmul.f32 0.125, %v188_v40 }
 0x141   :  { %v190_v42 = vadd.f32 1e-05, %v189_v41 }
 0x143   :  { %652 = vrsqrt.f32 %v190_v42 }
 0x14d   :  { %v653_v47 = vpop.eup %652 }
 0x14e   :  { %v193_v48 = vmul.f32 %v653_v47, %v192_v45 }
 0x150   :  { %v197_v49 = vrot.slane %v193_v48, %v196_v46 }
 0x152   :  { %v198_v51 = vmul.f32 %v197_v49, %v181_v33 }
 0x154   :  { %v206_v52 = vadd.f32 %v510_v50, %v198_v51 }
 0x156   :  { %v207_v53 = vpack.c.bf16 %v206_v52, %v206_v52 }
 0x158   :  { %597 = vmatmul.mubr.bf16.vlgmr.msra.gmra.mrb[0].mxu1 %v207_v53 }
 0x22b   :  { %v315_v63 = vpop.f32.mrb[0].mxu1 }
 0x22c   :  { %v316_v1 = vadd.f32 %v512_v62, %v315_v63  ;;  %v598_v2 = vpop.f32.mrb[1].mxu1 }
 0x22d   :  { %v318_v3 = vpop.f32.mrb[2].mxu1 }
 0x22e   :  { %v321_v4 = vmax.f32 %v316_v1, 0.0  ;;  %v599_v5 = vpop.f32.mrb[3].mxu1 }
 0x230   :  { %v322_v6 = vrot.slane %v321_v4, 4 }
 0x232   :  { %v323_v7 = vadd.f32 %v322_v6, %v321_v4 }
 0x234   :  { %v324_v8 = vrot.slane %v323_v7, 2 }
 0x236   :  { %v325_v9 = vadd.f32 %v324_v8, %v323_v7 }
 0x238   :  { %v326_v10 = vrot.slane %v325_v9, 1 }
 0x23a   :  { %v327_v11 = vadd.f32 %v326_v10, %v325_v9 }
 0x23c   :  { %v328_v12 = vmul.f32 0.125, %v327_v11 }
 0x23e   :  { %v329_v0 = vsub.f32 %v321_v4, %v328_v12 }
 0x240   :  { %v330_v13 = vmul.f32 %v329_v0, %v329_v0 }
 0x242   :  { %v331_v14 = vrot.slane %v330_v13, 4 }
 0x244   :  { %v332_v15 = vadd.f32 %v331_v14, %v330_v13 }
 0x246   :  { %v333_v16 = vrot.slane %v332_v15, 2 }
 0x248   :  { %v334_v17 = vadd.f32 %v333_v16, %v332_v15 }
 0x24a   :  { %v335_v18 = vrot.slane %v334_v17, 1 }
 0x24c   :  { %v336_v19 = vadd.f32 %v335_v18, %v334_v17 }
 0x24e   :  { %v337_v20 = vmul.f32 0.125, %v336_v19 }
 0x250   :  { %v338_v21 = vadd.f32 1e-05, %v337_v20 }
 0x252   :  { %654 = vrsqrt.f32 %v338_v21 }
 0x25c   :  { %v655_v23 = vpop.eup %654 }
 0x25d   :  { %v342_v24 = vmul.f32 %v655_v23, %v521_v22 }
 0x25f   :  { %v346_v25 = vrot.slane %v342_v24, %v196_v46 }
 0x261   :  { %v347_v27 = vmul.f32 %v346_v25, %v329_v0 }
 0x263   :  { %v356_v28 = vadd.f32 %v523_v26, %v347_v27 }
 0x265   :  { %v358_v29 = vpack.c.bf16 %v356_v28, %v356_v28  ;;  %357 = vst [vmem:[#allocation8] sm:$0xff] %v356_v28 }
 0x267   :  { %617 = vmatmul.mubr.bf16.vlgmr.msra.gmra.mrb[4].mxu0 %v358_v29 }
 0x268   :  { %711 = shalt.err (!%p708_p6)
}
 0x269   :  { %s712_s23 = scalar_lea.hbm %s918_s8, 128 }
 0x26a   :  { %p713_p7 = scmp.ne.s32.totalorder %s918_s8, %s712_s23  ;;  %p716_p8 = scmp.lt.u32.totalorder %s712_s23, %s918_s8 }
 0x26c   :  { %p718_p9 = pnand %p716_p8, %p713_p7 }
 0x26e   :  { %721 = shalt.err (!%p718_p9)
}
 0x26f   :  { %490 = dma.vmem_to_hbm [thread:$0]  %s488_s20, 128, %s918_s8, [#allocation9]   ;;  %v524_v30 = vld [vmem:[%s916_s6] ss:$0 sm:$0xff] }
 0x270   :  { %s759_s5 = smov [#allocation7]  }
 0x271   :  { %s477_s30 = sshll.u32 %s759_s5, 4  ;;  %s478_s30 = int_to_ptr.vmem [resolvable:$true] %s477_s30 }
 0x272   :  { %s722_s0 = scalar_lea.vmem %s478_s30, 128  ;;  %p727_p11 = scmp.lt.s32.totalorder %s478_s30, %s478_s30 }
 0x273   :  { %p723_p10 = scmp.ne.s32.totalorder %s478_s30, %s722_s0  ;;  %p728_p12 = scmp.lt.s32.totalorder %s722_s0, %s722_s0 }
 0x275   :  { %p729_p13 = por %p728_p12, %p727_p11 }
 0x277   :  { %p730_p0 = pnand %p729_p13, %p723_p10 }
 0x33a   :  { %v464_v31 = vpop.f32.mrb[4].mxu0 }
 0x33b   :  { %v465_v32 = vadd.f32 %v524_v30, %v464_v31  ;;  %v618_v33 = vpop.f32.mrb[5].mxu0 }
 0x33c   :  { %v467_v34 = vpop.f32.mrb[6].mxu0 }
 0x33d   :  { %470 = vst [vmem:[#allocation7] sm:$0xff] %v465_v32  ;;  %v619_v35 = vpop.f32.mrb[7].mxu0 }
 0x33e   :  { %733 = shalt.err (!%p730_p0)
}
 0x33f   :  { %s734_s6 = scalar_lea.hbm %s917_s7, 128 }
 0x340   :  { %p735_p1 = scmp.ne.s32.totalorder %s917_s7, %s734_s6  ;;  %p738_p2 = scmp.lt.u32.totalorder %s734_s6, %s917_s7 }
 0x342   :  { %p740_p3 = pnand %p738_p2, %p735_p1 }
 0x344   :  { %743 = shalt.err (!%p740_p3)
}
 0x345   :  { %480 = dma.vmem_to_hbm [thread:$0]  %s478_s30, 128, %s917_s7, [#allocation4]  }
 0x346   :  { %748 = dma.done.wait [#allocation4], 128  }
 0x347   :  { %749 = vsyncadd [#allocation4], 4294967168 }
 0x348   :  { %750 = dma.done.wait [#allocation9], 128  }
 0x349   :  { %751 = vsyncadd [#allocation9], 4294967168 }
 0x34a   :  { %497 = vsyncpa [#allocation3], 1 }
 0x34b   :  { %498 = vsyncpa [#allocation6], 1 }
 0x34c   :  { %499 = vsyncpa [#allocation4], 1 }
 0x34d   :  { %500 = vsyncpa [#allocation9], 1 }

</bundles_post_ra>
